<compile_context>
chip_gen: v7x
topology: tpu7x:2x2x1
jax: 0.10.0
libtpu: 0.0.40
codegen_flags: <defaults>
</compile_context>

<pallas_src>
import functools

import jax
import jax.numpy as jnp
from jax.experimental import pallas as pl
from jax.experimental.pallas import tpu as pltpu

# ----------------------------------------------------------------------------
# Irreps configuration: node_feats_irreps = "32x0e + 32x1o"
# ----------------------------------------------------------------------------
MUL = 32
IRREPS = [(MUL, 0), (MUL, 1)]                       # (multiplicity, l)
DIM = sum(mul * (2 * l + 1) for mul, l in IRREPS)   # 32*1 + 32*3 = 128

SINGLE_BLOCK_N = 2048   # up to this many (padded) rows: one block, no pipeline
MAX_TILE_N = 8192       # node-dimension tile cap for large N
OUT_DTYPE = jnp.bfloat16


def _round_up(x, m):
    return -(-x // m) * m


# ----------------------------------------------------------------------------
# Pallas kernel: y = x @ W_eff
#   x tile arrives in f32 (read once from HBM), cast to bf16 on the VPU,
#   bf16 x bf16 matmul on the MXU with f32 accumulation, bf16 store.
# ----------------------------------------------------------------------------
def _o3_linear_kernel(x_ref, w_ref, o_ref):
    o_ref[...] = jnp.dot(
        x_ref[...].astype(w_ref.dtype), w_ref[...],
        preferred_element_type=jnp.float32,
    ).astype(o_ref.dtype)


def _choose_grid(n_rows):
    """(grid_n, tile) with tile a multiple of 16 and balanced across blocks."""
    n16 = max(16, _round_up(n_rows, 16))
    if n16 <= SINGLE_BLOCK_N:
        return 1, n16
    # Balanced tiles: grid first, then tile = ceil(n/grid) rounded to 16.
    # grid >= 2 keeps both v7x TensorCores busy; padding stays < 16 rows/block.
    grid_n = max(2, pl.cdiv(n16, MAX_TILE_N))
    tile = _round_up(pl.cdiv(n16, grid_n), 16)
    return grid_n, tile


def o3_linear_pallas(x, w_eff_bf16):
    """x: (N, DIM) float32, w_eff_bf16: (DIM, DIM) bfloat16 -> (N, DIM) bf16."""
    n, d = x.shape
    assert d == DIM and w_eff_bf16.shape == (DIM, DIM)

    grid_n, tile = _choose_grid(n)
    n_pad = grid_n * tile
    if n_pad != n:
        # Zero rows are harmless; fused inside jit, sliced off below.
        x = jnp.pad(x, ((0, n_pad - n), (0, 0)))

    in_bytes = jnp.dtype(x.dtype).itemsize
    out_bytes = jnp.dtype(OUT_DTYPE).itemsize
    cost = pl.CostEstimate(
        flops=2 * n_pad * DIM * DIM,
        transcendentals=0,
        bytes_accessed=n_pad * DIM * (in_bytes + out_bytes) + DIM * DIM * 2,
    )

    out = pl.pallas_call(
        _o3_linear_kernel,
        out_shape=jax.ShapeDtypeStruct((n_pad, DIM), OUT_DTYPE),
        grid_spec=pltpu.PrefetchScalarGridSpec(
            num_scalar_prefetch=0,
            grid=(grid_n,),
            in_specs=[
                pl.BlockSpec((tile, DIM), lambda i: (i, 0)),
                pl.BlockSpec((DIM, DIM), lambda i: (0, 0)),  # weight resident
            ],
            out_specs=pl.BlockSpec((tile, DIM), lambda i: (i, 0)),
        ),
        compiler_params=pltpu.CompilerParams(
            dimension_semantics=("parallel",),
            vmem_limit_bytes=32 * 1024 * 1024,
        ),
        cost_estimate=cost,
    )(x, w_eff_bf16)

    return out[:n] if n_pad != n else out


# ----------------------------------------------------------------------------
# Parameter setup (deterministic, mirrors o3.Linear internal weights)
# ----------------------------------------------------------------------------
def init_lin_weights(key):
    """One (mul, mul) weight per irrep, ~N(0,1) like e3nn internal weights."""
    keys = jax.random.split(key, len(IRREPS))
    return [
        jax.random.normal(k, (mul, mul), dtype=jnp.float32)
        for k, (mul, l) in zip(keys, IRREPS)
    ]


def o3_linear_effective_weight(per_irrep_weights):
    """Block-diagonal effective weight in e3nn flat layout.

    For irrep (mul, l): out[w*(2l+1)+m] = sum_u W[u,w]/sqrt(mul) * in[u*(2l+1)+m],
    i.e. the block is kron(W, I_{2l+1}) / sqrt(mul).
    """
    blocks = []
    for (mul, l), w in zip(IRREPS, per_irrep_weights):
        eye = jnp.eye(2 * l + 1, dtype=w.dtype)
        blocks.append(jnp.kron(w, eye) / jnp.sqrt(jnp.float32(mul)))
    return jax.scipy.linalg.block_diag(*blocks)


def prepare_params(key):
    """Build params once; bf16 W_eff is hoisted out of the per-call forward."""
    lin1 = init_lin_weights(key)
    w_eff = o3_linear_effective_weight(lin1)
    return {
        "lin1": lin1,
        "lin1_w_eff_bf16": w_eff.astype(jnp.bfloat16),
    }


def o3_linear_reference(x, per_irrep_weights):
    """Pure-JAX f32 reference of e3nn o3.Linear on flat features."""
    outs = []
    off = 0
    for (mul, l), w in zip(IRREPS, per_irrep_weights):
        width = mul * (2 * l + 1)
        blk = x[:, off:off + width].reshape(x.shape[0], mul, 2 * l + 1)
        out = jnp.einsum("nui,uw->nwi", blk, w) / jnp.sqrt(jnp.float32(mul))
        outs.append(out.reshape(x.shape[0], width))
        off += width
    return jnp.concatenate(outs, axis=-1)


# ----------------------------------------------------------------------------
# Module forward (jit-wrapped so pad / slice fuse with the pallas_call)
# ----------------------------------------------------------------------------
@functools.partial(jax.jit, static_argnames=("use_direct",))
def polynomial_many_body_block_forward(node_feats, sc, node_attrs, params,
                                       use_direct=True):
    if use_direct:
        return o3_linear_pallas(node_feats, params["lin1_w_eff_bf16"])
    # TODO(synk): use_direct=False path (lin1/lin2/lin3 + reshape_irreps +
    # SymmetricContraction + linear + sc) needs e3nn symmetric-contraction
    # U-coefficient tables which are not reproducible in-script; not implemented.
    raise NotImplementedError("use_direct=False path not implemented")


# ----------------------------------------------------------------------------
# Main
# ----------------------------------------------------------------------------
if __name__ == "__main__":
    key = jax.random.PRNGKey(0)
    k_feat, k_sc, k_attr, k_w = jax.random.split(key, 4)

    NUM_ELEMENTS = 3
    params = prepare_params(k_w)

    # bf16 weights/inputs/outputs (f32 accumulation) -> bf16-level tolerance.
    tol = 5e-2

    # Test 1: N=64 (aligned, single block, matches the module's typical use).
    N_NODES = 64
    node_feats = jax.random.normal(k_feat, (N_NODES, DIM), dtype=jnp.float32)
    sc = jax.random.normal(k_sc, (N_NODES, DIM), dtype=jnp.float32)        # unused (direct path)
    node_attrs = jax.nn.one_hot(
        jax.random.randint(k_attr, (N_NODES,), 0, NUM_ELEMENTS), NUM_ELEMENTS
    ).astype(jnp.float32)                                                  # unused (direct path)

    out = polynomial_many_body_block_forward(node_feats, sc, node_attrs, params,
                                             use_direct=True)
    out = jax.block_until_ready(out)
    ref = o3_linear_reference(node_feats, params["lin1"])
    assert out.shape == (N_NODES, DIM)
    assert jnp.allclose(out.astype(jnp.float32), ref, atol=tol, rtol=tol), \
        "mismatch vs reference (N=64)"

    # Test 2: ragged N (exercises the pad-to-16 + slice path).
    N2 = 200
    x2 = jax.random.normal(jax.random.PRNGKey(1), (N2, DIM), dtype=jnp.float32)
    out2 = polynomial_many_body_block_forward(
        x2, jnp.zeros((N2, DIM), jnp.float32),
        jnp.zeros((N2, NUM_ELEMENTS), jnp.float32), params, use_direct=True)
    out2 = jax.block_until_ready(out2)
    ref2 = o3_linear_reference(x2, params["lin1"])
    assert out2.shape == (N2, DIM)
    assert jnp.allclose(out2.astype(jnp.float32), ref2, atol=tol, rtol=tol), \
        "mismatch vs reference (ragged N)"

    print("KERNEL_OK")
</pallas_src>

<mosaic_0001>
module attributes {stable_mosaic.version = 11 : i64} {
  func.func @_o3_linear_kernel(%arg0: i32, %arg1: memref<64x128xf32, #tpu.memory_space<vmem>>, %arg2: memref<128x128xbf16, #tpu.memory_space<vmem>>, %arg3: memref<64x128xbf16, #tpu.memory_space<vmem>>) attributes {dimension_semantics = [#tpu.dimension_semantics<parallel>], iteration_bounds = array<i64: 1>, scalar_prefetch = 0 : i64, scratch_operands = 0 : i64, tpu.core_type = #tpu.core_type<tc>, window_params = [{transform_indices = @transform_0, window_bounds = array<i64: 64, 128>}, {pipeline_mode = #tpu.pipeline_mode<synchronous>, transform_indices = @transform_1, window_bounds = array<i64: 128, 128>}, {transform_indices = @transform_2, window_bounds = array<i64: 64, 128>}]} {
    %c0 = arith.constant 0 : index
    %c0_0 = arith.constant 0 : index
    %0 = vector.load %arg1[%c0, %c0_0] : memref<64x128xf32, #tpu.memory_space<vmem>>, vector<64x128xf32>
    %1 = arith.truncf %0 : vector<64x128xf32> to vector<64x128xbf16>
    %c0_1 = arith.constant 0 : index
    %c0_2 = arith.constant 0 : index
    %2 = vector.load %arg2[%c0_1, %c0_2] : memref<128x128xbf16, #tpu.memory_space<vmem>>, vector<128x128xbf16>
    %cst = arith.constant dense<0.000000e+00> : vector<64x128xf32>
    %3 = tpu.matmul %1, %2, %cst {dimension_numbers = #tpu.dot_dimension_numbers<[1], [0], [0], [1], [0, 0, 1, 1], [], []>} : vector<64x128xbf16>, vector<128x128xbf16>, vector<64x128xf32> -> vector<64x128xf32>
    %4 = arith.truncf %3 : vector<64x128xf32> to vector<64x128xbf16>
    %c0_3 = arith.constant 0 : index
    %c0_4 = arith.constant 0 : index
    %5 = vector.load %arg3[%c0_3, %c0_4] : memref<64x128xbf16, #tpu.memory_space<vmem>>, vector<64x128xbf16>
    tpu.vector_store %arg3[%c0_3, %c0_4], %4 {strides = array<i32>} : memref<64x128xbf16, #tpu.memory_space<vmem>>, vector<64x128xbf16>,
    return
  }
  func.func @transform_0(%arg0: i32) -> (i32, i32) {
    %c0_i32 = arith.constant 0 : i32
    %c0_i32_0 = arith.constant 0 : i32
    return %arg0, %c0_i32 : i32, i32
  }
  func.func @transform_1(%arg0: i32) -> (i32, i32) {
    %c0_i32 = arith.constant 0 : i32
    %c0_i32_0 = arith.constant 0 : i32
    %c0_i32_1 = arith.constant 0 : i32
    return %c0_i32, %c0_i32_0 : i32, i32
  }
  func.func @transform_2(%arg0: i32) -> (i32, i32) {
    %c0_i32 = arith.constant 0 : i32
    %c0_i32_0 = arith.constant 0 : i32
    return %arg0, %c0_i32 : i32, i32
  }
}

</mosaic_0001>

<bundles_post_ra>
// kernel: polynomial_many_body_block_forward.1
= control target key start
LH: loop header
LB: loop body
LE: loop exit
PB: predicated region body
PF: predicated region fallthrough
CT: control target
= control target key end

     0   :  { %7 = vsyncpa [#allocation3], 0  ;;  %s490_s0 = inlined_call_operand.hbm [shape: f32[64,128], index: 0, kind: input, shape index: {}]   ;;  %s491_s1 = inlined_call_operand.hbm [shape: bf16[128,128], index: 1, kind: input, shape index: {}]   ;;  %s492_s2 = inlined_call_operand.hbm [shape: bf16[64,128], index: 2, kind: output, shape index: {}]  }
   0x1   :  { %8 = vsyncpa [#allocation6], 0 }
   0x2   :  { %9 = vsyncpa [#allocation4], 0  ;;  %s426_s9 = smov [#allocation2]   ;;  %s354_s13 = scalar_lea.hbm %s490_s0, 1024 }
   0x3   :  { %s15_s10 = sshll.u32 %s426_s9, 4  ;;  %p355_p0 = scmp.ne.s32.totalorder %s490_s0, %s354_s13  ;;  %s16_s10 = int_to_ptr.vmem [resolvable:$true] %s15_s10 }
   0x4   :  { %p358_p1 = scmp.lt.u32.totalorder %s354_s13, %s490_s0 }
   0x6   :  { %p360_p2 = pnand %p358_p1, %p355_p0 }
   0x8   :  { %363 = shalt.err (!%p360_p2)
}
   0x9   :  { %s364_s18 = scalar_lea.vmem %s16_s10, 1024  ;;  %p369_p4 = scmp.lt.s32.totalorder %s16_s10, %s16_s10 }
   0xa   :  { %p365_p3 = scmp.ne.s32.totalorder %s16_s10, %s364_s18  ;;  %p370_p5 = scmp.lt.s32.totalorder %s364_s18, %s364_s18 }
   0xc   :  { %p371_p6 = por %p370_p5, %p369_p4 }
   0xe   :  { %p372_p7 = pnand %p371_p6, %p365_p3 }
  0x10   :  { %375 = shalt.err (!%p372_p7)
}
  0x11   :  { %s427_s19 = smov 128   ;;  %s428_s20 = smov 8  }
  0x12   :  { %21 = dma.hbm_to_vmem [thread:$0]  %s490_s0, 1024, %s16_s10, [#allocation3], %s427_s19, %s427_s19, %s428_s20  }
  0x13   :  { %s429_s23 = smov [#allocation5]   ;;  %s376_s27 = scalar_lea.hbm %s491_s1, 1024 }
  0x14   :  { %s27_s24 = sshll.u32 %s429_s23, 4  ;;  %p377_p8 = scmp.ne.s32.totalorder %s491_s1, %s376_s27  ;;  %s28_s24 = int_to_ptr.vmem [resolvable:$true] %s27_s24 }
  0x15   :  { %p380_p9 = scmp.lt.u32.totalorder %s376_s27, %s491_s1 }
  0x17   :  { %p382_p10 = pnand %p380_p9, %p377_p8 }
  0x19   :  { %385 = shalt.err (!%p382_p10)
}
  0x1a   :  { %s386_s4 = scalar_lea.vmem %s28_s24, 1024  ;;  %p391_p12 = scmp.lt.s32.totalorder %s28_s24, %s28_s24 }
  0x1b   :  { %p387_p11 = scmp.ne.s32.totalorder %s28_s24, %s386_s4  ;;  %p392_p13 = scmp.lt.s32.totalorder %s386_s4, %s386_s4 }
  0x1d   :  { %p393_p0 = por %p392_p13, %p391_p12 }
  0x1f   :  { %p394_p1 = pnand %p393_p0, %p387_p11 }
  0x21   :  { %397 = shalt.err (!%p394_p1)
}
  0x22   :  { %s430_s0 = smov 64   ;;  %s431_s5 = smov 4  }
  0x23   :  { %33 = dma.hbm_to_vmem [thread:$0]  %s491_s1, 1024, %s28_s24, [#allocation6], %s430_s0, %s430_s0, %s431_s5  }
  0x24   :  { %420 = dma.done.wait [#allocation3], 1024  }
  0x25   :  { %421 = vsyncadd [#allocation3], 4294966272 }
  0x26   :  { %422 = dma.done.wait [#allocation6], 1024  }
  0x27   :  { %423 = vsyncadd [#allocation6], 4294966272  ;;  %v346_v0 = vld [vmem:[#allocation5] sm:$0xff]   ;;  %v347_v1 = vld [vmem:[#allocation5 + $0x8] sm:$0xff]   ;;  %s432_s1 = smov [#allocation7]  }
  0x28   :  { %299 = vmatprep.subr.bf16.mxu0 %v346_v0  ;;  %323 = vmatprep.subr.bf16.mxu1 %v346_v0  ;;  %v348_v2 = vld [vmem:[#allocation5 + $0x10] sm:$0xff]   ;;  %v349_v3 = vld [vmem:[#allocation5 + $0x18] sm:$0xff]   ;;  %v41_v4 = vld [vmem:[#allocation2] sm:$0xff]  ;;  %s227_s8 = sshll.u32 %s432_s1, 4  ;;  %s228_s8 = int_to_ptr.vmem [resolvable:$true] %s227_s8 }
  0x29   :  { %300 = vmatpush3.bf16.msra.mxu0 %v346_v0  ;;  %331 = vmatpush3.bf16.msra.mxu1 %v346_v0  ;;  %v42_v5 = vld [vmem:[#allocation2 + $0x8] sm:$0xff]  ;;  %v45_v6 = vld [vmem:[#allocation2 + $0x20] sm:$0xff]  ;;  %v352_v12 = vld [vmem:[#allocation5 + $0x30] sm:$0xff]   ;;  %s398_s9 = scalar_lea.vmem %s228_s8, 512  ;;  %p403_p3 = scmp.lt.s32.totalorder %s228_s8, %s228_s8 }
  0x2a   :  { %301 = vmatprep.subr.bf16.mxu0 %v347_v1  ;;  %324 = vmatprep.subr.bf16.mxu1 %v347_v1  ;;  %v49_v7 = vpack.c.bf16 %v42_v5, %v41_v4  ;;  %v46_v8 = vld [vmem:[#allocation2 + $0x28] sm:$0xff]  ;;  %v350_v10 = vld [vmem:[#allocation5 + $0x20] sm:$0xff]   ;;  %v353_v13 = vld [vmem:[#allocation5 + $0x38] sm:$0xff]   ;;  %p399_p2 = scmp.ne.s32.totalorder %s228_s8, %s398_s9  ;;  %p404_p4 = scmp.lt.s32.totalorder %s398_s9, %s398_s9 }
  0x2b   :  { %v51_v9 = vpack.c.bf16 %v46_v8, %v45_v6  ;;  %v351_v11 = vld [vmem:[#allocation5 + $0x28] sm:$0xff]   ;;  %v43_v14 = vld [vmem:[#allocation2 + $0x10] sm:$0xff]  ;;  %v44_v15 = vld [vmem:[#allocation2 + $0x18] sm:$0xff] }
  0x2c   :  { %315 = vmatprep.mubr.bf16.mxu0 %v49_v7  ;;  %v47_v16 = vld [vmem:[#allocation2 + $0x30] sm:$0xff]  ;;  %v48_v17 = vld [vmem:[#allocation2 + $0x38] sm:$0xff]  ;;  %v50_v18 = vpack.c.bf16 %v44_v15, %v43_v14  ;;  %p405_p5 = por %p404_p4, %p403_p3 }
  0x2d   :  { %302 = vmatpush3.bf16.msra.mxu0 %v347_v1  ;;  %332 = vmatpush3.bf16.msra.mxu1 %v347_v1  ;;  %v52_v19 = vpack.c.bf16 %v48_v17, %v47_v16 }
  0x2e   :  { %303 = vmatprep.subr.bf16.mxu0 %v348_v2  ;;  %325 = vmatprep.subr.bf16.mxu1 %v348_v2  ;;  %p406_p6 = pnand %p405_p5, %p399_p2 }
  0x2f   :  { %319 = vmatprep.mubr.bf16.mxu1 %v51_v9 }
  0x31   :  { %304 = vmatpush3.bf16.msra.mxu0 %v348_v2  ;;  %333 = vmatpush3.bf16.msra.mxu1 %v348_v2 }
  0x32   :  { %305 = vmatprep.subr.bf16.mxu0 %v349_v3  ;;  %326 = vmatprep.subr.bf16.mxu1 %v349_v3 }
  0x35   :  { %306 = vmatpush3.bf16.msra.mxu0 %v349_v3  ;;  %334 = vmatpush3.bf16.msra.mxu1 %v349_v3 }
  0x36   :  { %307 = vmatprep.subr.bf16.mxu0 %v350_v10  ;;  %327 = vmatprep.subr.bf16.mxu1 %v350_v10 }
  0x39   :  { %308 = vmatpush3.bf16.msra.mxu0 %v350_v10  ;;  %335 = vmatpush3.bf16.msra.mxu1 %v350_v10 }
  0x3a   :  { %309 = vmatprep.subr.bf16.mxu0 %v351_v11  ;;  %328 = vmatprep.subr.bf16.mxu1 %v351_v11 }
  0x3d   :  { %310 = vmatpush3.bf16.msra.mxu0 %v351_v11  ;;  %336 = vmatpush3.bf16.msra.mxu1 %v351_v11 }
  0x3e   :  { %311 = vmatprep.subr.bf16.mxu0 %v352_v12  ;;  %329 = vmatprep.subr.bf16.mxu1 %v352_v12 }
  0x41   :  { %312 = vmatpush3.bf16.msra.mxu0 %v352_v12  ;;  %337 = vmatpush3.bf16.msra.mxu1 %v352_v12 }
  0x42   :  { %313 = vmatprep.subr.bf16.mxu0 %v353_v13  ;;  %330 = vmatprep.subr.bf16.mxu1 %v353_v13 }
  0x45   :  { %314 = vmatpush3.bf16.msra.mxu0 %v353_v13  ;;  %338 = vmatpush3.bf16.msra.mxu1 %v353_v13 }
  0x48   :  { %316 = vmatmul.mubr.bf16.vlgmr.msra.gmra.mrb[0].mxu0 %v50_v18  ;;  %320 = vmatmul.mubr.bf16.vlgmr.msra.gmra.mrb[0].mxu1 %v52_v19 }
 0x11b   :  { %v317_v20 = vpop.f32.mrb[0].mxu0  ;;  %v321_v21 = vpop.f32.mrb[0].mxu1 }
 0x11c   :  { %v151_v22 = vpop.f32.mrb[1].mxu0  ;;  %v167_v23 = vpop.f32.mrb[1].mxu1 }
 0x11d   :  { %v318_v24 = vpop.f32.mrb[2].mxu0  ;;  %v322_v25 = vpop.f32.mrb[2].mxu1 }
 0x11e   :  { %v272_v26 = vpack.c.bf16 %v318_v24, %v317_v20  ;;  %v282_v27 = vpack.c.bf16 %v322_v25, %v321_v21  ;;  %v154_v28 = vpop.f32.mrb[3].mxu0  ;;  %v170_v29 = vpop.f32.mrb[3].mxu1 }
 0x11f   :  { %v267_v30 = vpack.c.bf16 %v154_v28, %v151_v22  ;;  %v277_v31 = vpack.c.bf16 %v170_v29, %v167_v23 }
 0x120   :  { %284 = vst [vmem:[#allocation7 + $0x8] sm:$0xff] %v272_v26   ;;  %286 = vst [vmem:[#allocation7 + $0x18] sm:$0xff] %v282_v27  }
 0x121   :  { %268 = vst [vmem:[#allocation7] sm:$0xff] %v267_v30   ;;  %285 = vst [vmem:[#allocation7 + $0x10] sm:$0xff] %v277_v31  }
 0x122   :  { %409 = shalt.err (!%p406_p6)
}
 0x123   :  { %s410_s12 = scalar_lea.hbm %s492_s2, 512 }
 0x124   :  { %p411_p7 = scmp.ne.s32.totalorder %s492_s2, %s410_s12  ;;  %p414_p8 = scmp.lt.u32.totalorder %s410_s12, %s492_s2 }
 0x126   :  { %p416_p9 = pnand %p414_p8, %p411_p7 }
 0x128   :  { %419 = shalt.err (!%p416_p9)
}
 0x129   :  { %233 = dma.vmem_to_hbm [thread:$0]  %s228_s8, 512, %s492_s2, [#allocation4], %s430_s0, %s430_s0, %s431_s5  }
 0x12a   :  { %424 = dma.done.wait [#allocation4], 512  }
 0x12b   :  { %425 = vsyncadd [#allocation4], 4294966784 }
 0x12c   :  { %237 = vsyncpa [#allocation3], 1 }
 0x12d   :  { %238 = vsyncpa [#allocation6], 1 }
 0x12e   :  { %239 = vsyncpa [#allocation4], 1 }

</bundles_post_ra>
